<compile_context>
chip_gen: v6e
topology: v6e:2x2x1
jax: 0.10.0
libtpu: 0.0.40
codegen_flags: <defaults>
</compile_context>

<pallas_src>
import functools

import jax
import jax.numpy as jnp
from jax.experimental import pallas as pl
from jax.experimental.pallas import tpu as pltpu


# ---------------------------------------------------------------------------
# The fused Inception kernel (one image per grid step)
# ---------------------------------------------------------------------------

def _inception_kernel(
    x_ref,              # (Cin, MBp)  one image, channels-first, flattened h*W + w (bf16)
    mw_ref,             # (5, 1, MBp) W-boundary masks for shifts -2..+2 (f32)
    mh_ref,             # (5, 1, MBp) H-boundary masks for shifts -2..+2 (f32)
    inv_ref,            # (1, MBp)    1 / (# valid taps) of the 3x3 avg pool (0 on lane pad)
    ws_ref, bs_ref,     # fused 1x1 stem (branches 1,2,3,4): (Cstem, Cin) bf16, (Cstem, 1) f32
    w2a_ref, b2a_ref,   # branch2 (1,3) conv:      (hid21, 3*hid21) bf16, (hid21, 1) f32
    w2b_ref, b2b_ref,   # branch2 (3,1) conv + BN: (out2,  3*hid21) bf16, (out2, 1) f32
    w3a1_ref, b3a1_ref, # branch3 sep#1 (1,5):      (hid31, 5*hid31) bf16, (hid31, 1) f32
    w3b1_ref, b3b1_ref, # branch3 sep#1 (5,1) + BN: (hid33, 5*hid31) bf16, (hid33, 1) f32
    w3a2_ref, b3a2_ref, # branch3 sep#2 (1,5):      (hid33, 5*hid33) bf16, (hid33, 1) f32
    w3b2_ref, b3b2_ref, # branch3 sep#2 (5,1) + BN: (out3,  5*hid33) bf16, (out3, 1) f32
    o_ref,              # (Ctot, MBp) f32
    *, W, MB, out1, hid21, hid31):
  f32 = jnp.float32
  bf16 = jnp.bfloat16

  # Hoist the 10 boundary-mask rows once per grid step (no re-loads per tap).
  mwr = [mw_ref[i] for i in range(5)]   # each (1, MBp) f32
  mhr = [mh_ref[i] for i in range(5)]

  def shift_w(v, s):
    # result[:, m] = v[:, m + s] if column w+s is inside the image, else 0.
    if s == 0:
      return v
    return pltpu.roll(v, (-s) % MB, axis=1) * mwr[s + 2]

  def shift_h(v, s):
    # result[:, m] = v[:, m + s*W] if row h+s is inside the image, else 0.
    if s == 0:
      return v
    return pltpu.roll(v, (-s * W) % MB, axis=1) * mhr[s + 2]

  def conv1d(v, w_ref_, b_ref_, k, pad, shift_fn, relu):
    # k-tap 1-D conv (along W or H): tap-concat -> ONE MXU matmul per conv.
    taps = [shift_fn(v, t - pad) for t in range(k)]        # f32 elementwise
    vcat = jnp.concatenate(taps, axis=0).astype(bf16)      # (k*cin, MBp), one cast
    acc = jnp.dot(w_ref_[...], vcat, preferred_element_type=f32) + b_ref_[...]
    if relu:
      acc = jnp.maximum(acc, 0.0)
    return acc

  x = x_ref[...]                                           # (Cin, MBp) bf16

  # Fused 1x1 stem: [branch1 | branch2-stem | branch3-stem | branch4-1x1] in one matmul.
  stem = jnp.dot(ws_ref[...], x, preferred_element_type=f32) + bs_ref[...]
  act = jnp.maximum(stem, 0.0)
  c1, c2, c3 = out1, out1 + hid21, out1 + hid21 + hid31

  # Branch 1 (Conv1x1 + BN + ReLU): store immediately (keeps live vregs low).
  o_ref[0:c1, :] = act[0:c1]
  off = c1

  # Branch 2: Conv(1,3) -> Conv(3,1) -> BN -> ReLU.
  h2 = conv1d(act[c1:c2], w2a_ref, b2a_ref, 3, 1, shift_w, relu=False)
  x2 = conv1d(h2, w2b_ref, b2b_ref, 3, 1, shift_h, relu=True)
  n2 = x2.shape[0]
  o_ref[off:off + n2, :] = x2
  off2 = off + n2

  # Branch 3: two separable 5-convs, BN + ReLU after each (1,5)->(5,1) pair.
  h3 = conv1d(act[c2:c3], w3a1_ref, b3a1_ref, 5, 2, shift_w, relu=False)
  h3 = conv1d(h3, w3b1_ref, b3b1_ref, 5, 2, shift_h, relu=True)
  h3 = conv1d(h3, w3a2_ref, b3a2_ref, 5, 2, shift_w, relu=False)
  x3 = conv1d(h3, w3b2_ref, b3b2_ref, 5, 2, shift_h, relu=True)
  n3 = x3.shape[0]
  o_ref[off2:off2 + n3, :] = x3
  off3 = off2 + n3

  # Branch 4: 3x3 avg pool (count_include_pad=False) of the 1x1-conv output (the 1x1+BN
  # commutes with the weighted average), then ReLU.  Separable: 4 rolls + 4 adds.
  t4 = stem[c3:]                                           # NO ReLU yet
  row = t4 + shift_w(t4, -1) + shift_w(t4, 1)
  pool = row + shift_h(row, -1) + shift_h(row, 1)
  x4 = jnp.maximum(pool * inv_ref[...], 0.0)
  o_ref[off3:, :] = x4


# ---------------------------------------------------------------------------
# Glue: BN folding (eval mode), masks, pool counts, pallas_call wrapper
# ---------------------------------------------------------------------------

def _fold_bn_1x1(w, b, bn, eps=1e-5):
  """Fold eval-mode BN into a 1x1 conv. w: (cout, cin), b: (cout,)."""
  gamma, beta, mean, var = bn
  s = gamma / jnp.sqrt(var + eps)
  return w * s[:, None], (b - mean) * s + beta


def _fold_bn_taps(w, b, bn, eps=1e-5):
  """Fold eval-mode BN into a tapped conv. w: (k, cout, cin), b: (cout,)."""
  gamma, beta, mean, var = bn
  s = gamma / jnp.sqrt(var + eps)
  return w * s[None, :, None], (b - mean) * s + beta


def _col(b):
  return b[:, None].astype(jnp.float32)   # (cout,) -> (cout, 1)


def _flat_taps(w):
  """(k, cout, cin) -> (cout, k*cin) bf16, tap-major to match the in-kernel concat."""
  k, co, ci = w.shape
  return jnp.transpose(w, (1, 0, 2)).reshape(co, k * ci).astype(jnp.bfloat16)


def inception_forward(x_nchw, params):
  N, Cin, H, W = x_nchw.shape
  MB = H * W
  MBp = ((MB + 127) // 128) * 128      # lane-align the flattened spatial axis
  p = params

  # --- fold BN; fuse all four 1x1 convs into one stem weight (branch-4's 1x1 commutes
  #     with the count_include_pad=False average pool, so it can precede the pooling) ---
  w1f, b1f = _fold_bn_1x1(*p["b1"])
  w20f, b20f = _fold_bn_1x1(*p["b2_0"])
  w30f, b30f = _fold_bn_1x1(*p["b3_0"])
  w4f, b4f = _fold_bn_1x1(*p["b4"])
  ws = jnp.concatenate([w1f, w20f, w30f, w4f], axis=0).astype(jnp.bfloat16)
  bs = _col(jnp.concatenate([b1f, b20f, b30f, b4f], axis=0))

  (w2a, b2a, w2b, b2b), bn2 = p["b2_1"]
  w2bf, b2bf = _fold_bn_taps(w2b, b2b, bn2)
  (w3a1, b3a1, w3b1, b3b1), bn31 = p["b3_1"]
  w3b1f, b3b1f = _fold_bn_taps(w3b1, b3b1, bn31)
  (w3a2, b3a2, w3b2, b3b2), bn32 = p["b3_2"]
  w3b2f, b3b2f = _fold_bn_taps(w3b2, b3b2, bn32)

  out1, hid21, hid31 = w1f.shape[0], w20f.shape[0], w30f.shape[0]
  out2, out3, out4 = w2bf.shape[1], w3b2f.shape[1], w4f.shape[0]
  Ctot = out1 + out2 + out3 + out4

  # --- boundary masks for shifts -2..+2 along W / H (zeroed on the lane padding), and
  #     the 3x3-pool 1/count map ---
  idx = jnp.arange(MBp, dtype=jnp.int32)
  valid = idx < MB
  w_idx, h_idx = idx % W, idx // W

  def boundary_masks(pos, size):
    return jnp.stack(
        [((pos + s >= 0) & (pos + s < size) & valid).astype(jnp.float32)
         for s in range(-2, 3)], axis=0).reshape(5, 1, MBp)

  mw = boundary_masks(w_idx, W)
  mh = boundary_masks(h_idx, H)
  cnt = (mh[1, 0] + mh[2, 0] + mh[3, 0]) * (mw[1, 0] + mw[2, 0] + mw[3, 0])
  inv = jnp.where(cnt > 0, 1.0 / jnp.maximum(cnt, 1.0), 0.0).reshape(1, MBp)

  # Free layout: NCHW -> (N, Cin, H*W), bf16, lane-padded.  No HBM transposes.
  x3d = x_nchw.reshape(N, Cin, MB).astype(jnp.bfloat16)
  if MBp != MB:
    x3d = jnp.pad(x3d, ((0, 0), (0, 0), (0, MBp - MB)))

  kern = functools.partial(_inception_kernel, W=W, MB=MBp,
                           out1=out1, hid21=hid21, hid31=hid31)

  def _full(a):
    zeros = (0,) * a.ndim
    return pl.BlockSpec(a.shape, lambda n, z=zeros: z)

  operands = (x3d, mw, mh, inv, ws, bs,
              _flat_taps(w2a), _col(b2a), _flat_taps(w2bf), _col(b2bf),
              _flat_taps(w3a1), _col(b3a1), _flat_taps(w3b1f), _col(b3b1f),
              _flat_taps(w3a2), _col(b3a2), _flat_taps(w3b2f), _col(b3b2f))

  in_specs = [pl.BlockSpec((None, Cin, MBp), lambda n: (n, 0, 0))]
  in_specs += [_full(a) for a in operands[1:]]

  out = pl.pallas_call(
      kern,
      out_shape=jax.ShapeDtypeStruct((N, Ctot, MBp), jnp.float32),
      grid=(N,),
      in_specs=in_specs,
      out_specs=pl.BlockSpec((None, Ctot, MBp), lambda n: (n, 0, 0)),
      compiler_params=pltpu.CompilerParams(dimension_semantics=("parallel",)),
  )(*operands)

  if MBp != MB:
    out = out[..., :MB]
  # (N, Ctot, H*W) -> (N, Ctot, H, W): matches torch.cat([...], dim=1) in NCHW.
  return out.reshape(N, Ctot, H, W)


# ---------------------------------------------------------------------------
# Parameter construction (deterministic, synthetic)
# ---------------------------------------------------------------------------

def init_conv1x1(key, cin, cout):
  k1, k2 = jax.random.split(key)
  w = 0.1 * jax.random.normal(k1, (cout, cin), jnp.float32)      # (cout, cin)
  b = 0.1 * jax.random.normal(k2, (cout,), jnp.float32)
  return w, b


def init_sep(key, k, cin, chid, cout):
  k1, k2, k3, k4 = jax.random.split(key, 4)
  w1 = 0.1 * jax.random.normal(k1, (k, chid, cin), jnp.float32)   # (1,k) conv: (tap, out, in)
  b1 = 0.1 * jax.random.normal(k2, (chid,), jnp.float32)
  w2 = 0.1 * jax.random.normal(k3, (k, cout, chid), jnp.float32)  # (k,1) conv: (tap, out, in)
  b2 = 0.1 * jax.random.normal(k4, (cout,), jnp.float32)
  return w1, b1, w2, b2


def init_bn(key, c):
  k1, k2, k3, k4 = jax.random.split(key, 4)
  gamma = 1.0 + 0.1 * jax.random.normal(k1, (c,), jnp.float32)
  beta = 0.1 * jax.random.normal(k2, (c,), jnp.float32)
  mean = 0.1 * jax.random.normal(k3, (c,), jnp.float32)
  var = 0.5 + jax.random.uniform(k4, (c,), jnp.float32)
  return gamma, beta, mean, var


def make_params(key, in_dims, out1, hid21, out2, hid31, hid33, out3, out4):
  ks = jax.random.split(key, 14)
  return {
      # branch 1: 1x1 conv + BN + ReLU
      "b1": (*init_conv1x1(ks[0], in_dims, out1), init_bn(ks[1], out1)),
      # branch 2: 1x1 conv, then separable 3-conv
      "b2_0": (*init_conv1x1(ks[2], in_dims, hid21), init_bn(ks[3], hid21)),
      "b2_1": (init_sep(ks[4], 3, hid21, hid21, out2), init_bn(ks[5], out2)),
      # branch 3: 1x1 conv, then two separable 5-convs
      "b3_0": (*init_conv1x1(ks[6], in_dims, hid31), init_bn(ks[7], hid31)),
      "b3_1": (init_sep(ks[8], 5, hid31, hid31, hid33), init_bn(ks[9], hid33)),
      "b3_2": (init_sep(ks[10], 5, hid33, hid33, out3), init_bn(ks[11], out3)),
      # branch 4: avgpool + 1x1 conv + BN + ReLU
      "b4": (*init_conv1x1(ks[12], in_dims, out4), init_bn(ks[13], out4)),
  }


# ---------------------------------------------------------------------------
# Main
# ---------------------------------------------------------------------------

if __name__ == "__main__":
  key = jax.random.PRNGKey(0)
  k_params, k_x = jax.random.split(key)

  # Small module configuration (channel-slice boundaries are multiples of 8).
  in_dims, out1 = 4, 8
  hid21, out2 = 8, 8
  hid31, hid33, out3 = 8, 8, 8
  out4 = 8

  params = make_params(k_params, in_dims, out1, hid21, out2, hid31, hid33, out3, out4)

  N, H, W = 2, 16, 16
  x = jax.random.normal(k_x, (N, in_dims, H, W), jnp.float32)  # NCHW, like PyTorch

  out = jax.jit(inception_forward)(x, params)
  jax.block_until_ready(out)

  expected_channels = out1 + out2 + out3 + out4
  assert out.shape == (N, expected_channels, H, W), out.shape
  assert out.dtype == jnp.float32
  assert bool(jnp.isfinite(out).all())
  print("KERNEL_OK")
</pallas_src>

<mosaic_0001>
module attributes {stable_mosaic.version = 11 : i64} {
  func.func @_inception_kernel(%arg0: i32, %arg1: memref<1x4x256xbf16, #tpu.memory_space<vmem>>, %arg2: memref<5x1x256xf32, #tpu.memory_space<vmem>>, %arg3: memref<5x1x256xf32, #tpu.memory_space<vmem>>, %arg4: memref<1x256xf32, #tpu.memory_space<vmem>>, %arg5: memref<32x4xbf16, #tpu.memory_space<vmem>>, %arg6: memref<32x1xf32, #tpu.memory_space<vmem>>, %arg7: memref<8x24xbf16, #tpu.memory_space<vmem>>, %arg8: memref<8x1xf32, #tpu.memory_space<vmem>>, %arg9: memref<8x24xbf16, #tpu.memory_space<vmem>>, %arg10: memref<8x1xf32, #tpu.memory_space<vmem>>, %arg11: memref<8x40xbf16, #tpu.memory_space<vmem>>, %arg12: memref<8x1xf32, #tpu.memory_space<vmem>>, %arg13: memref<8x40xbf16, #tpu.memory_space<vmem>>, %arg14: memref<8x1xf32, #tpu.memory_space<vmem>>, %arg15: memref<8x40xbf16, #tpu.memory_space<vmem>>, %arg16: memref<8x1xf32, #tpu.memory_space<vmem>>, %arg17: memref<8x40xbf16, #tpu.memory_space<vmem>>, %arg18: memref<8x1xf32, #tpu.memory_space<vmem>>, %arg19: memref<1x32x256xf32, #tpu.memory_space<vmem>>) attributes {dimension_semantics = [#tpu.dimension_semantics<parallel>], iteration_bounds = array<i64: 2>, scalar_prefetch = 0 : i64, scratch_operands = 0 : i64, tpu.core_type = #tpu.core_type<tc>, window_params = [{transform_indices = @transform_0, window_bounds = array<i64: 1, 4, 256>}, {pipeline_mode = #tpu.pipeline_mode<synchronous>, transform_indices = @transform_1, window_bounds = array<i64: 5, 1, 256>}, {pipeline_mode = #tpu.pipeline_mode<synchronous>, transform_indices = @transform_2, window_bounds = array<i64: 5, 1, 256>}, {pipeline_mode = #tpu.pipeline_mode<synchronous>, transform_indices = @transform_3, window_bounds = array<i64: 1, 256>}, {pipeline_mode = #tpu.pipeline_mode<synchronous>, transform_indices = @transform_4, window_bounds = array<i64: 32, 4>}, {pipeline_mode = #tpu.pipeline_mode<synchronous>, transform_indices = @transform_5, window_bounds = array<i64: 32, 1>}, {pipeline_mode = #tpu.pipeline_mode<synchronous>, transform_indices = @transform_6, window_bounds = array<i64: 8, 24>}, {pipeline_mode = #tpu.pipeline_mode<synchronous>, transform_indices = @transform_7, window_bounds = array<i64: 8, 1>}, {pipeline_mode = #tpu.pipeline_mode<synchronous>, transform_indices = @transform_8, window_bounds = array<i64: 8, 24>}, {pipeline_mode = #tpu.pipeline_mode<synchronous>, transform_indices = @transform_9, window_bounds = array<i64: 8, 1>}, {pipeline_mode = #tpu.pipeline_mode<synchronous>, transform_indices = @transform_10, window_bounds = array<i64: 8, 40>}, {pipeline_mode = #tpu.pipeline_mode<synchronous>, transform_indices = @transform_11, window_bounds = array<i64: 8, 1>}, {pipeline_mode = #tpu.pipeline_mode<synchronous>, transform_indices = @transform_12, window_bounds = array<i64: 8, 40>}, {pipeline_mode = #tpu.pipeline_mode<synchronous>, transform_indices = @transform_13, window_bounds = array<i64: 8, 1>}, {pipeline_mode = #tpu.pipeline_mode<synchronous>, transform_indices = @transform_14, window_bounds = array<i64: 8, 40>}, {pipeline_mode = #tpu.pipeline_mode<synchronous>, transform_indices = @transform_15, window_bounds = array<i64: 8, 1>}, {pipeline_mode = #tpu.pipeline_mode<synchronous>, transform_indices = @transform_16, window_bounds = array<i64: 8, 40>}, {pipeline_mode = #tpu.pipeline_mode<synchronous>, transform_indices = @transform_17, window_bounds = array<i64: 8, 1>}, {transform_indices = @transform_18, window_bounds = array<i64: 1, 32, 256>}]} {
    %c0 = arith.constant 0 : index
    %c0_0 = arith.constant 0 : index
    %c0_1 = arith.constant 0 : index
    %0 = vector.load %arg2[%c0, %c0_0, %c0_1] : memref<5x1x256xf32, #tpu.memory_space<vmem>>, vector<1x1x256xf32>
    %1 = vector.shape_cast %0 : vector<1x1x256xf32> to vector<1x256xf32>
    %c1 = arith.constant 1 : index
    %c0_2 = arith.constant 0 : index
    %c0_3 = arith.constant 0 : index
    %2 = vector.load %arg2[%c1, %c0_2, %c0_3] : memref<5x1x256xf32, #tpu.memory_space<vmem>>, vector<1x1x256xf32>
    %3 = vector.shape_cast %2 : vector<1x1x256xf32> to vector<1x256xf32>
    %c3 = arith.constant 3 : index
    %c0_4 = arith.constant 0 : index
    %c0_5 = arith.constant 0 : index
    %4 = vector.load %arg2[%c3, %c0_4, %c0_5] : memref<5x1x256xf32, #tpu.memory_space<vmem>>, vector<1x1x256xf32>
    %5 = vector.shape_cast %4 : vector<1x1x256xf32> to vector<1x256xf32>
    %c4 = arith.constant 4 : index
    %c0_6 = arith.constant 0 : index
    %c0_7 = arith.constant 0 : index
    %6 = vector.load %arg2[%c4, %c0_6, %c0_7] : memref<5x1x256xf32, #tpu.memory_space<vmem>>, vector<1x1x256xf32>
    %7 = vector.shape_cast %6 : vector<1x1x256xf32> to vector<1x256xf32>
    %c0_8 = arith.constant 0 : index
    %c0_9 = arith.constant 0 : index
    %c0_10 = arith.constant 0 : index
    %8 = vector.load %arg3[%c0_8, %c0_9, %c0_10] : memref<5x1x256xf32, #tpu.memory_space<vmem>>, vector<1x1x256xf32>
    %9 = vector.shape_cast %8 : vector<1x1x256xf32> to vector<1x256xf32>
    %c1_11 = arith.constant 1 : index
    %c0_12 = arith.constant 0 : index
    %c0_13 = arith.constant 0 : index
    %10 = vector.load %arg3[%c1_11, %c0_12, %c0_13] : memref<5x1x256xf32, #tpu.memory_space<vmem>>, vector<1x1x256xf32>
    %11 = vector.shape_cast %10 : vector<1x1x256xf32> to vector<1x256xf32>
    %c3_14 = arith.constant 3 : index
    %c0_15 = arith.constant 0 : index
    %c0_16 = arith.constant 0 : index
    %12 = vector.load %arg3[%c3_14, %c0_15, %c0_16] : memref<5x1x256xf32, #tpu.memory_space<vmem>>, vector<1x1x256xf32>
    %13 = vector.shape_cast %12 : vector<1x1x256xf32> to vector<1x256xf32>
    %c4_17 = arith.constant 4 : index
    %c0_18 = arith.constant 0 : index
    %c0_19 = arith.constant 0 : index
    %14 = vector.load %arg3[%c4_17, %c0_18, %c0_19] : memref<5x1x256xf32, #tpu.memory_space<vmem>>, vector<1x1x256xf32>
    %15 = vector.shape_cast %14 : vector<1x1x256xf32> to vector<1x256xf32>
    %c0_20 = arith.constant 0 : index
    %c0_21 = arith.constant 0 : index
    %c0_22 = arith.constant 0 : index
    %16 = vector.load %arg1[%c0_20, %c0_21, %c0_22] : memref<1x4x256xbf16, #tpu.memory_space<vmem>>, vector<1x4x256xbf16>
    %17 = vector.shape_cast %16 : vector<1x4x256xbf16> to vector<4x256xbf16>
    %c0_23 = arith.constant 0 : index
    %c0_24 = arith.constant 0 : index
    %18 = vector.load %arg5[%c0_23, %c0_24] : memref<32x4xbf16, #tpu.memory_space<vmem>>, vector<32x4xbf16>
    %cst = arith.constant dense<0.000000e+00> : vector<32x256xf32>
    %19 = tpu.matmul %18, %17, %cst {dimension_numbers = #tpu.dot_dimension_numbers<[1], [0], [0], [1], [0, 0, 1, 1], [], []>} : vector<32x4xbf16>, vector<4x256xbf16>, vector<32x256xf32> -> vector<32x256xf32>
    %c0_25 = arith.constant 0 : index
    %c0_26 = arith.constant 0 : index
    %20 = vector.load %arg6[%c0_25, %c0_26] : memref<32x1xf32, #tpu.memory_space<vmem>>, vector<32x1xf32>
    %21 = vector.broadcast %20 : vector<32x1xf32> to vector<32x256xf32>
    %22 = arith.addf %19, %21 : vector<32x256xf32>
    %cst_27 = arith.constant 0.000000e+00 : f32
    %23 = vector.broadcast %cst_27 : f32 to vector<32x256xf32>
    %24 = arith.maximumf %22, %23 : vector<32x256xf32>
    %25 = vector.extract_strided_slice %24 {offsets = [0, 0], sizes = [8, 256], strides = [1, 1]} : vector<32x256xf32> to vector<8x256xf32>
    %c0_28 = arith.constant 0 : index
    %c0_29 = arith.constant 0 : index
    %c0_30 = arith.constant 0 : index
    %26 = vector.load %arg19[%c0_28, %c0_29, %c0_30] : memref<1x32x256xf32, #tpu.memory_space<vmem>>, vector<1x8x256xf32>
    %27 = vector.shape_cast %26 : vector<1x8x256xf32> to vector<8x256xf32>
    %28 = vector.shape_cast %25 : vector<8x256xf32> to vector<1x8x256xf32>
    tpu.vector_store %arg19[%c0_28, %c0_29, %c0_30], %28 {strides = array<i32>} : memref<1x32x256xf32, #tpu.memory_space<vmem>>, vector<1x8x256xf32>,
    %29 = vector.extract_strided_slice %24 {offsets = [8, 0], sizes = [8, 256], strides = [1, 1]} : vector<32x256xf32> to vector<8x256xf32>
    %c1_i32 = arith.constant 1 : i32
    %30 = tpu.dynamic_rotate %29 by %c1_i32 dim 1 : vector<8x256xf32>, i32 -> vector<8x256xf32>
    %31 = vector.broadcast %3 : vector<1x256xf32> to vector<8x256xf32>
    %32 = arith.mulf %30, %31 : vector<8x256xf32>
    %c255_i32 = arith.constant 255 : i32
    %33 = tpu.dynamic_rotate %29 by %c255_i32 dim 1 : vector<8x256xf32>, i32 -> vector<8x256xf32>
    %34 = vector.broadcast %5 : vector<1x256xf32> to vector<8x256xf32>
    %35 = arith.mulf %33, %34 : vector<8x256xf32>
    %36 = tpu.concatenate %32, %29, %35 in 0 : vector<8x256xf32>, vector<8x256xf32>, vector<8x256xf32> -> vector<24x256xf32>
    %37 = arith.truncf %36 : vector<24x256xf32> to vector<24x256xbf16>
    %c0_31 = arith.constant 0 : index
    %c0_32 = arith.constant 0 : index
    %38 = vector.load %arg7[%c0_31, %c0_32] : memref<8x24xbf16, #tpu.memory_space<vmem>>, vector<8x24xbf16>
    %cst_33 = arith.constant dense<0.000000e+00> : vector<8x256xf32>
    %39 = tpu.matmul %38, %37, %cst_33 {dimension_numbers = #tpu.dot_dimension_numbers<[1], [0], [0], [1], [0, 0, 1, 1], [], []>} : vector<8x24xbf16>, vector<24x256xbf16>, vector<8x256xf32> -> vector<8x256xf32>
    %c0_34 = arith.constant 0 : index
    %c0_35 = arith.constant 0 : index
    %40 = vector.load %arg8[%c0_34, %c0_35] : memref<8x1xf32, #tpu.memory_space<vmem>>, vector<8x1xf32>
    %41 = vector.broadcast %40 : vector<8x1xf32> to vector<8x256xf32>
    %42 = arith.addf %39, %41 : vector<8x256xf32>
    %c16_i32 = arith.constant 16 : i32
    %43 = tpu.dynamic_rotate %42 by %c16_i32 dim 1 : vector<8x256xf32>, i32 -> vector<8x256xf32>
    %44 = vector.broadcast %11 : vector<1x256xf32> to vector<8x256xf32>
    %45 = arith.mulf %43, %44 : vector<8x256xf32>
    %c240_i32 = arith.constant 240 : i32
    %46 = tpu.dynamic_rotate %42 by %c240_i32 dim 1 : vector<8x256xf32>, i32 -> vector<8x256xf32>
    %47 = vector.broadcast %13 : vector<1x256xf32> to vector<8x256xf32>
    %48 = arith.mulf %46, %47 : vector<8x256xf32>
    %49 = tpu.concatenate %45, %42, %48 in 0 : vector<8x256xf32>, vector<8x256xf32>, vector<8x256xf32> -> vector<24x256xf32>
    %50 = arith.truncf %49 : vector<24x256xf32> to vector<24x256xbf16>
    %c0_36 = arith.constant 0 : index
    %c0_37 = arith.constant 0 : index
    %51 = vector.load %arg9[%c0_36, %c0_37] : memref<8x24xbf16, #tpu.memory_space<vmem>>, vector<8x24xbf16>
    %cst_38 = arith.constant dense<0.000000e+00> : vector<8x256xf32>
    %52 = tpu.matmul %51, %50, %cst_38 {dimension_numbers = #tpu.dot_dimension_numbers<[1], [0], [0], [1], [0, 0, 1, 1], [], []>} : vector<8x24xbf16>, vector<24x256xbf16>, vector<8x256xf32> -> vector<8x256xf32>
    %c0_39 = arith.constant 0 : index
    %c0_40 = arith.constant 0 : index
    %53 = vector.load %arg10[%c0_39, %c0_40] : memref<8x1xf32, #tpu.memory_space<vmem>>, vector<8x1xf32>
    %54 = vector.broadcast %53 : vector<8x1xf32> to vector<8x256xf32>
    %55 = arith.addf %52, %54 : vector<8x256xf32>
    %cst_41 = arith.constant 0.000000e+00 : f32
    %56 = vector.broadcast %cst_41 : f32 to vector<8x256xf32>
    %57 = arith.maximumf %55, %56 : vector<8x256xf32>
    %c0_42 = arith.constant 0 : index
    %c8 = arith.constant 8 : index
    %c0_43 = arith.constant 0 : index
    %58 = vector.load %arg19[%c0_42, %c8, %c0_43] : memref<1x32x256xf32, #tpu.memory_space<vmem>>, vector<1x8x256xf32>
    %59 = vector.shape_cast %58 : vector<1x8x256xf32> to vector<8x256xf32>
    %60 = vector.shape_cast %57 : vector<8x256xf32> to vector<1x8x256xf32>
    tpu.vector_store %arg19[%c0_42, %c8, %c0_43], %60 {strides = array<i32>} : memref<1x32x256xf32, #tpu.memory_space<vmem>>, vector<1x8x256xf32>,
    %61 = vector.extract_strided_slice %24 {offsets = [16, 0], sizes = [8, 256], strides = [1, 1]} : vector<32x256xf32> to vector<8x256xf32>
    %c2_i32 = arith.constant 2 : i32
    %62 = tpu.dynamic_rotate %61 by %c2_i32 dim 1 : vector<8x256xf32>, i32 -> vector<8x256xf32>
    %63 = vector.broadcast %1 : vector<1x256xf32> to vector<8x256xf32>
    %64 = arith.mulf %62, %63 : vector<8x256xf32>
    %c1_i32_44 = arith.constant 1 : i32
    %65 = tpu.dynamic_rotate %61 by %c1_i32_44 dim 1 : vector<8x256xf32>, i32 -> vector<8x256xf32>
    %66 = vector.broadcast %3 : vector<1x256xf32> to vector<8x256xf32>
    %67 = arith.mulf %65, %66 : vector<8x256xf32>
    %c255_i32_45 = arith.constant 255 : i32
    %68 = tpu.dynamic_rotate %61 by %c255_i32_45 dim 1 : vector<8x256xf32>, i32 -> vector<8x256xf32>
    %69 = vector.broadcast %5 : vector<1x256xf32> to vector<8x256xf32>
    %70 = arith.mulf %68, %69 : vector<8x256xf32>
    %c254_i32 = arith.constant 254 : i32
    %71 = tpu.dynamic_rotate %61 by %c254_i32 dim 1 : vector<8x256xf32>, i32 -> vector<8x256xf32>
    %72 = vector.broadcast %7 : vector<1x256xf32> to vector<8x256xf32>
    %73 = arith.mulf %71, %72 : vector<8x256xf32>
    %74 = tpu.concatenate %64, %67, %61, %70, %73 in 0 : vector<8x256xf32>, vector<8x256xf32>, vector<8x256xf32>, vector<8x256xf32>, vector<8x256xf32> -> vector<40x256xf32>
    %75 = arith.truncf %74 : vector<40x256xf32> to vector<40x256xbf16>
    %c0_46 = arith.constant 0 : index
    %c0_47 = arith.constant 0 : index
    %76 = vector.load %arg11[%c0_46, %c0_47] : memref<8x40xbf16, #tpu.memory_space<vmem>>, vector<8x40xbf16>
    %cst_48 = arith.constant dense<0.000000e+00> : vector<8x256xf32>
    %77 = tpu.matmul %76, %75, %cst_48 {dimension_numbers = #tpu.dot_dimension_numbers<[1], [0], [0], [1], [0, 0, 1, 1], [], []>} : vector<8x40xbf16>, vector<40x256xbf16>, vector<8x256xf32> -> vector<8x256xf32>
    %c0_49 = arith.constant 0 : index
    %c0_50 = arith.constant 0 : index
    %78 = vector.load %arg12[%c0_49, %c0_50] : memref<8x1xf32, #tpu.memory_space<vmem>>, vector<8x1xf32>
    %79 = vector.broadcast %78 : vector<8x1xf32> to vector<8x256xf32>
    %80 = arith.addf %77, %79 : vector<8x256xf32>
    %c32_i32 = arith.constant 32 : i32
    %81 = tpu.dynamic_rotate %80 by %c32_i32 dim 1 : vector<8x256xf32>, i32 -> vector<8x256xf32>
    %82 = vector.broadcast %9 : vector<1x256xf32> to vector<8x256xf32>
    %83 = arith.mulf %81, %82 : vector<8x256xf32>
    %c16_i32_51 = arith.constant 16 : i32
    %84 = tpu.dynamic_rotate %80 by %c16_i32_51 dim 1 : vector<8x256xf32>, i32 -> vector<8x256xf32>
    %85 = vector.broadcast %11 : vector<1x256xf32> to vector<8x256xf32>
    %86 = arith.mulf %84, %85 : vector<8x256xf32>
    %c240_i32_52 = arith.constant 240 : i32
    %87 = tpu.dynamic_rotate %80 by %c240_i32_52 dim 1 : vector<8x256xf32>, i32 -> vector<8x256xf32>
    %88 = vector.broadcast %13 : vector<1x256xf32> to vector<8x256xf32>
    %89 = arith.mulf %87, %88 : vector<8x256xf32>
    %c224_i32 = arith.constant 224 : i32
    %90 = tpu.dynamic_rotate %80 by %c224_i32 dim 1 : vector<8x256xf32>, i32 -> vector<8x256xf32>
    %91 = vector.broadcast %15 : vector<1x256xf32> to vector<8x256xf32>
    %92 = arith.mulf %90, %91 : vector<8x256xf32>
    %93 = tpu.concatenate %83, %86, %80, %89, %92 in 0 : vector<8x256xf32>, vector<8x256xf32>, vector<8x256xf32>, vector<8x256xf32>, vector<8x256xf32> -> vector<40x256xf32>
    %94 = arith.truncf %93 : vector<40x256xf32> to vector<40x256xbf16>
    %c0_53 = arith.constant 0 : index
    %c0_54 = arith.constant 0 : index
    %95 = vector.load %arg13[%c0_53, %c0_54] : memref<8x40xbf16, #tpu.memory_space<vmem>>, vector<8x40xbf16>
    %cst_55 = arith.constant dense<0.000000e+00> : vector<8x256xf32>
    %96 = tpu.matmul %95, %94, %cst_55 {dimension_numbers = #tpu.dot_dimension_numbers<[1], [0], [0], [1], [0, 0, 1, 1], [], []>} : vector<8x40xbf16>, vector<40x256xbf16>, vector<8x256xf32> -> vector<8x256xf32>
    %c0_56 = arith.constant 0 : index
    %c0_57 = arith.constant 0 : index
    %97 = vector.load %arg14[%c0_56, %c0_57] : memref<8x1xf32, #tpu.memory_space<vmem>>, vector<8x1xf32>
    %98 = vector.broadcast %97 : vector<8x1xf32> to vector<8x256xf32>
    %99 = arith.addf %96, %98 : vector<8x256xf32>
    %cst_58 = arith.constant 0.000000e+00 : f32
    %100 = vector.broadcast %cst_58 : f32 to vector<8x256xf32>
    %101 = arith.maximumf %99, %100 : vector<8x256xf32>
    %c2_i32_59 = arith.constant 2 : i32
    %102 = tpu.dynamic_rotate %101 by %c2_i32_59 dim 1 : vector<8x256xf32>, i32 -> vector<8x256xf32>
    %103 = vector.broadcast %1 : vector<1x256xf32> to vector<8x256xf32>
    %104 = arith.mulf %102, %103 : vector<8x256xf32>
    %c1_i32_60 = arith.constant 1 : i32
    %105 = tpu.dynamic_rotate %101 by %c1_i32_60 dim 1 : vector<8x256xf32>, i32 -> vector<8x256xf32>
    %106 = vector.broadcast %3 : vector<1x256xf32> to vector<8x256xf32>
    %107 = arith.mulf %105, %106 : vector<8x256xf32>
    %c255_i32_61 = arith.constant 255 : i32
    %108 = tpu.dynamic_rotate %101 by %c255_i32_61 dim 1 : vector<8x256xf32>, i32 -> vector<8x256xf32>
    %109 = vector.broadcast %5 : vector<1x256xf32> to vector<8x256xf32>
    %110 = arith.mulf %108, %109 : vector<8x256xf32>
    %c254_i32_62 = arith.constant 254 : i32
    %111 = tpu.dynamic_rotate %101 by %c254_i32_62 dim 1 : vector<8x256xf32>, i32 -> vector<8x256xf32>
    %112 = vector.broadcast %7 : vector<1x256xf32> to vector<8x256xf32>
    %113 = arith.mulf %111, %112 : vector<8x256xf32>
    %114 = tpu.concatenate %104, %107, %101, %110, %113 in 0 : vector<8x256xf32>, vector<8x256xf32>, vector<8x256xf32>, vector<8x256xf32>, vector<8x256xf32> -> vector<40x256xf32>
    %115 = arith.truncf %114 : vector<40x256xf32> to vector<40x256xbf16>
    %c0_63 = arith.constant 0 : index
    %c0_64 = arith.constant 0 : index
    %116 = vector.load %arg15[%c0_63, %c0_64] : memref<8x40xbf16, #tpu.memory_space<vmem>>, vector<8x40xbf16>
    %cst_65 = arith.constant dense<0.000000e+00> : vector<8x256xf32>
    %117 = tpu.matmul %116, %115, %cst_65 {dimension_numbers = #tpu.dot_dimension_numbers<[1], [0], [0], [1], [0, 0, 1, 1], [], []>} : vector<8x40xbf16>, vector<40x256xbf16>, vector<8x256xf32> -> vector<8x256xf32>
    %c0_66 = arith.constant 0 : index
    %c0_67 = arith.constant 0 : index
    %118 = vector.load %arg16[%c0_66, %c0_67] : memref<8x1xf32, #tpu.memory_space<vmem>>, vector<8x1xf32>
    %119 = vector.broadcast %118 : vector<8x1xf32> to vector<8x256xf32>
    %120 = arith.addf %117, %119 : vector<8x256xf32>
    %c32_i32_68 = arith.constant 32 : i32
    %121 = tpu.dynamic_rotate %120 by %c32_i32_68 dim 1 : vector<8x256xf32>, i32 -> vector<8x256xf32>
    %122 = vector.broadcast %9 : vector<1x256xf32> to vector<8x256xf32>
    %123 = arith.mulf %121, %122 : vector<8x256xf32>
    %c16_i32_69 = arith.constant 16 : i32
    %124 = tpu.dynamic_rotate %120 by %c16_i32_69 dim 1 : vector<8x256xf32>, i32 -> vector<8x256xf32>
    %125 = vector.broadcast %11 : vector<1x256xf32> to vector<8x256xf32>
    %126 = arith.mulf %124, %125 : vector<8x256xf32>
    %c240_i32_70 = arith.constant 240 : i32
    %127 = tpu.dynamic_rotate %120 by %c240_i32_70 dim 1 : vector<8x256xf32>, i32 -> vector<8x256xf32>
    %128 = vector.broadcast %13 : vector<1x256xf32> to vector<8x256xf32>
    %129 = arith.mulf %127, %128 : vector<8x256xf32>
    %c224_i32_71 = arith.constant 224 : i32
    %130 = tpu.dynamic_rotate %120 by %c224_i32_71 dim 1 : vector<8x256xf32>, i32 -> vector<8x256xf32>
    %131 = vector.broadcast %15 : vector<1x256xf32> to vector<8x256xf32>
    %132 = arith.mulf %130, %131 : vector<8x256xf32>
    %133 = tpu.concatenate %123, %126, %120, %129, %132 in 0 : vector<8x256xf32>, vector<8x256xf32>, vector<8x256xf32>, vector<8x256xf32>, vector<8x256xf32> -> vector<40x256xf32>
    %134 = arith.truncf %133 : vector<40x256xf32> to vector<40x256xbf16>
    %c0_72 = arith.constant 0 : index
    %c0_73 = arith.constant 0 : index
    %135 = vector.load %arg17[%c0_72, %c0_73] : memref<8x40xbf16, #tpu.memory_space<vmem>>, vector<8x40xbf16>
    %cst_74 = arith.constant dense<0.000000e+00> : vector<8x256xf32>
    %136 = tpu.matmul %135, %134, %cst_74 {dimension_numbers = #tpu.dot_dimension_numbers<[1], [0], [0], [1], [0, 0, 1, 1], [], []>} : vector<8x40xbf16>, vector<40x256xbf16>, vector<8x256xf32> -> vector<8x256xf32>
    %c0_75 = arith.constant 0 : index
    %c0_76 = arith.constant 0 : index
    %137 = vector.load %arg18[%c0_75, %c0_76] : memref<8x1xf32, #tpu.memory_space<vmem>>, vector<8x1xf32>
    %138 = vector.broadcast %137 : vector<8x1xf32> to vector<8x256xf32>
    %139 = arith.addf %136, %138 : vector<8x256xf32>
    %cst_77 = arith.constant 0.000000e+00 : f32
    %140 = vector.broadcast %cst_77 : f32 to vector<8x256xf32>
    %141 = arith.maximumf %139, %140 : vector<8x256xf32>
    %c0_78 = arith.constant 0 : index
    %c16 = arith.constant 16 : index
    %c0_79 = arith.constant 0 : index
    %142 = vector.load %arg19[%c0_78, %c16, %c0_79] : memref<1x32x256xf32, #tpu.memory_space<vmem>>, vector<1x8x256xf32>
    %143 = vector.shape_cast %142 : vector<1x8x256xf32> to vector<8x256xf32>
    %144 = vector.shape_cast %141 : vector<8x256xf32> to vector<1x8x256xf32>
    tpu.vector_store %arg19[%c0_78, %c16, %c0_79], %144 {strides = array<i32>} : memref<1x32x256xf32, #tpu.memory_space<vmem>>, vector<1x8x256xf32>,
    %145 = vector.extract_strided_slice %22 {offsets = [24, 0], sizes = [8, 256], strides = [1, 1]} : vector<32x256xf32> to vector<8x256xf32>
    %c1_i32_80 = arith.constant 1 : i32
    %146 = tpu.dynamic_rotate %145 by %c1_i32_80 dim 1 : vector<8x256xf32>, i32 -> vector<8x256xf32>
    %147 = vector.broadcast %3 : vector<1x256xf32> to vector<8x256xf32>
    %148 = arith.mulf %146, %147 : vector<8x256xf32>
    %149 = arith.addf %145, %148 : vector<8x256xf32>
    %c255_i32_81 = arith.constant 255 : i32
    %150 = tpu.dynamic_rotate %145 by %c255_i32_81 dim 1 : vector<8x256xf32>, i32 -> vector<8x256xf32>
    %151 = vector.broadcast %5 : vector<1x256xf32> to vector<8x256xf32>
    %152 = arith.mulf %150, %151 : vector<8x256xf32>
    %153 = arith.addf %149, %152 : vector<8x256xf32>
    %c16_i32_82 = arith.constant 16 : i32
    %154 = tpu.dynamic_rotate %153 by %c16_i32_82 dim 1 : vector<8x256xf32>, i32 -> vector<8x256xf32>
    %155 = vector.broadcast %11 : vector<1x256xf32> to vector<8x256xf32>
    %156 = arith.mulf %154, %155 : vector<8x256xf32>
    %157 = arith.addf %153, %156 : vector<8x256xf32>
    %c240_i32_83 = arith.constant 240 : i32
    %158 = tpu.dynamic_rotate %153 by %c240_i32_83 dim 1 : vector<8x256xf32>, i32 -> vector<8x256xf32>
    %159 = vector.broadcast %13 : vector<1x256xf32> to vector<8x256xf32>
    %160 = arith.mulf %158, %159 : vector<8x256xf32>
    %161 = arith.addf %157, %160 : vector<8x256xf32>
    %c0_84 = arith.constant 0 : index
    %c0_85 = arith.constant 0 : index
    %162 = vector.load %arg4[%c0_84, %c0_85] : memref<1x256xf32, #tpu.memory_space<vmem>>, vector<1x256xf32>
    %163 = vector.broadcast %162 : vector<1x256xf32> to vector<8x256xf32>
    %164 = arith.mulf %161, %163 : vector<8x256xf32>
    %cst_86 = arith.constant 0.000000e+00 : f32
    %165 = vector.broadcast %cst_86 : f32 to vector<8x256xf32>
    %166 = arith.maximumf %164, %165 : vector<8x256xf32>
    %c0_87 = arith.constant 0 : index
    %c24 = arith.constant 24 : index
    %c0_88 = arith.constant 0 : index
    %167 = vector.load %arg19[%c0_87, %c24, %c0_88] : memref<1x32x256xf32, #tpu.memory_space<vmem>>, vector<1x8x256xf32>
    %168 = vector.shape_cast %167 : vector<1x8x256xf32> to vector<8x256xf32>
    %169 = vector.shape_cast %166 : vector<8x256xf32> to vector<1x8x256xf32>
    tpu.vector_store %arg19[%c0_87, %c24, %c0_88], %169 {strides = array<i32>} : memref<1x32x256xf32, #tpu.memory_space<vmem>>, vector<1x8x256xf32>,
    return
  }
  func.func @transform_0(%arg0: i32) -> (i32, i32, i32) {
    %c0_i32 = arith.constant 0 : i32
    %c0_i32_0 = arith.constant 0 : i32
    %c0_i32_1 = arith.constant 0 : i32
    return %arg0, %c0_i32, %c0_i32_0 : i32, i32, i32
  }
  func.func @transform_1(%arg0: i32) -> (i32, i32, i32) {
    %c0_i32 = arith.constant 0 : i32
    %c0_i32_0 = arith.constant 0 : i32
    %c0_i32_1 = arith.constant 0 : i32
    %c0_i32_2 = arith.constant 0 : i32
    return %c0_i32, %c0_i32_0, %c0_i32_1 : i32, i32, i32
  }
  func.func @transform_2(%arg0: i32) -> (i32, i32, i32) {
    %c0_i32 = arith.constant 0 : i32
    %c0_i32_0 = arith.constant 0 : i32
    %c0_i32_1 = arith.constant 0 : i32
    %c0_i32_2 = arith.constant 0 : i32
    return %c0_i32, %c0_i32_0, %c0_i32_1 : i32, i32, i32
  }
  func.func @transform_3(%arg0: i32) -> (i32, i32) {
    %c0_i32 = arith.constant 0 : i32
    %c0_i32_0 = arith.constant 0 : i32
    %c0_i32_1 = arith.constant 0 : i32
    return %c0_i32, %c0_i32_0 : i32, i32
  }
  func.func @transform_4(%arg0: i32) -> (i32, i32) {
    %c0_i32 = arith.constant 0 : i32
    %c0_i32_0 = arith.constant 0 : i32
    %c0_i32_1 = arith.constant 0 : i32
    return %c0_i32, %c0_i32_0 : i32, i32
  }
  func.func @transform_5(%arg0: i32) -> (i32, i32) {
    %c0_i32 = arith.constant 0 : i32
    %c0_i32_0 = arith.constant 0 : i32
    %c0_i32_1 = arith.constant 0 : i32
    return %c0_i32, %c0_i32_0 : i32, i32
  }
  func.func @transform_6(%arg0: i32) -> (i32, i32) {
    %c0_i32 = arith.constant 0 : i32
    %c0_i32_0 = arith.constant 0 : i32
    %c0_i32_1 = arith.constant 0 : i32
    return %c0_i32, %c0_i32_0 : i32, i32
  }
  func.func @transform_7(%arg0: i32) -> (i32, i32) {
    %c0_i32 = arith.constant 0 : i32
    %c0_i32_0 = arith.constant 0 : i32
    %c0_i32_1 = arith.constant 0 : i32
    return %c0_i32, %c0_i32_0 : i32, i32
  }
  func.func @transform_8(%arg0: i32) -> (i32, i32) {
    %c0_i32 = arith.constant 0 : i32
    %c0_i32_0 = arith.constant 0 : i32
    %c0_i32_1 = arith.constant 0 : i32
    return %c0_i32, %c0_i32_0 : i32, i32
  }
  func.func @transform_9(%arg0: i32) -> (i32, i32) {
    %c0_i32 = arith.constant 0 : i32
    %c0_i32_0 = arith.constant 0 : i32
    %c0_i32_1 = arith.constant 0 : i32
    return %c0_i32, %c0_i32_0 : i32, i32
  }
  func.func @transform_10(%arg0: i32) -> (i32, i32) {
    %c0_i32 = arith.constant 0 : i32
    %c0_i32_0 = arith.constant 0 : i32
    %c0_i32_1 = arith.constant 0 : i32
    return %c0_i32, %c0_i32_0 : i32, i32
  }
  func.func @transform_11(%arg0: i32) -> (i32, i32) {
    %c0_i32 = arith.constant 0 : i32
    %c0_i32_0 = arith.constant 0 : i32
    %c0_i32_1 = arith.constant 0 : i32
    return %c0_i32, %c0_i32_0 : i32, i32
  }
  func.func @transform_12(%arg0: i32) -> (i32, i32) {
    %c0_i32 = arith.constant 0 : i32
    %c0_i32_0 = arith.constant 0 : i32
    %c0_i32_1 = arith.constant 0 : i32
    return %c0_i32, %c0_i32_0 : i32, i32
  }
  func.func @transform_13(%arg0: i32) -> (i32, i32) {
    %c0_i32 = arith.constant 0 : i32
    %c0_i32_0 = arith.constant 0 : i32
    %c0_i32_1 = arith.constant 0 : i32
    return %c0_i32, %c0_i32_0 : i32, i32
  }
  func.func @transform_14(%arg0: i32) -> (i32, i32) {
    %c0_i32 = arith.constant 0 : i32
    %c0_i32_0 = arith.constant 0 : i32
    %c0_i32_1 = arith.constant 0 : i32
    return %c0_i32, %c0_i32_0 : i32, i32
  }
  func.func @transform_15(%arg0: i32) -> (i32, i32) {
    %c0_i32 = arith.constant 0 : i32
    %c0_i32_0 = arith.constant 0 : i32
    %c0_i32_1 = arith.constant 0 : i32
    return %c0_i32, %c0_i32_0 : i32, i32
  }
  func.func @transform_16(%arg0: i32) -> (i32, i32) {
    %c0_i32 = arith.constant 0 : i32
    %c0_i32_0 = arith.constant 0 : i32
    %c0_i32_1 = arith.constant 0 : i32
    return %c0_i32, %c0_i32_0 : i32, i32
  }
  func.func @transform_17(%arg0: i32) -> (i32, i32) {
    %c0_i32 = arith.constant 0 : i32
    %c0_i32_0 = arith.constant 0 : i32
    %c0_i32_1 = arith.constant 0 : i32
    return %c0_i32, %c0_i32_0 : i32, i32
  }
  func.func @transform_18(%arg0: i32) -> (i32, i32, i32) {
    %c0_i32 = arith.constant 0 : i32
    %c0_i32_0 = arith.constant 0 : i32
    %c0_i32_1 = arith.constant 0 : i32
    return %arg0, %c0_i32, %c0_i32_0 : i32, i32, i32
  }
}

</mosaic_0001>

<bundles_post_ra>
// kernel: inception_forward.1
= control target key start
LH: loop header
LB: loop body
LE: loop exit
PB: predicated region body
PF: predicated region fallthrough
CT: control target
= control target key end

     0   :  { %s1642_s27 = smov 0   ;;  %s2094_s0 = inlined_call_operand.vmem [shape: bf16[2,4,256], index: 0, kind: input, shape index: {}]   ;;  %s2095_s1 = inlined_call_operand.vmem [shape: f32[5,1,256], index: 1, kind: input, shape index: {}]   ;;  %s2096_s2 = inlined_call_operand.vmem [shape: f32[5,1,256], index: 2, kind: input, shape index: {}]   ;;  %s2097_s3 = inlined_call_operand.vmem [shape: f32[1,256], index: 3, kind: input, shape index: {}]   ;;  %s2098_s4 = inlined_call_operand.vmem [shape: bf16[32,4], index: 4, kind: input, shape index: {}]   ;;  %s2099_s5 = inlined_call_operand.vmem [shape: f32[32,1], index: 5, kind: input, shape index: {}]   ;;  %s2100_s6 = inlined_call_operand.vmem [shape: bf16[8,24], index: 6, kind: input, shape index: {}]   ;;  %s2101_s7 = inlined_call_operand.vmem [shape: f32[8,1], index: 7, kind: input, shape index: {}]   ;;  %s2102_s8 = inlined_call_operand.vmem [shape: bf16[8,24], index: 8, kind: input, shape index: {}]   ;;  %s2103_s9 = inlined_call_operand.vmem [shape: f32[8,1], index: 9, kind: input, shape index: {}]   ;;  %s2104_s10 = inlined_call_operand.vmem [shape: bf16[8,40], index: 10, kind: input, shape index: {}]   ;;  %s2105_s11 = inlined_call_operand.vmem [shape: f32[8,1], index: 11, kind: input, shape index: {}]   ;;  %s2106_s12 = inlined_call_operand.vmem [shape: bf16[8,40], index: 12, kind: input, shape index: {}]   ;;  %s2107_s13 = inlined_call_operand.vmem [shape: f32[8,1], index: 13, kind: input, shape index: {}]   ;;  %s2108_s14 = inlined_call_operand.vmem [shape: bf16[8,40], index: 14, kind: input, shape index: {}]   ;;  %s2109_s15 = inlined_call_operand.vmem [shape: f32[8,1], index: 15, kind: input, shape index: {}]   ;;  %s2110_s16 = inlined_call_operand.vmem [shape: bf16[8,40], index: 16, kind: input, shape index: {}]   ;;  %s2111_s17 = inlined_call_operand.vmem [shape: f32[8,1], index: 17, kind: input, shape index: {}]   ;;  %s2112_s18 = inlined_call_operand.vmem [shape: f32[2,32,256], index: 18, kind: output, shape index: {}]  }
   0x1   :  { %2119 = sst [smem:[#allocation2_spill]] %s2094_s0 }
   0x2   :  { %2120 = sst [smem:[#allocation3_spill]] %s2095_s1 }
   0x3   :  { %2121 = sst [smem:[#allocation4_spill]] %s2096_s2 }
   0x4 LB: > { %s1472_s28 = sadd.s32 4294967295, %s1536_s27   ;;  %p1476_p0 = scmp.ge.s32.totalorder %s1536_s27, 1  ;;  %s1536_s27 = sphi %s1642_s27, %s28_s27  }
   0x5   : > { %p512_p1 = scmp.lt.s32.totalorder %s1536_s27, 3 }
   0x7   : > { %p513_p2 = pnand %p1476_p0, %p512_p1 }
   0x8   : > { %p566_p3 = scmp.lt.s32.totalorder (!%p513_p2), %s1472_s28, 1  ;;  %s2122_s22 = sld [smem:[#allocation2_spill]] (!%p513_p2) }
   0x9   : > { %516 = sbr.rel (%p513_p2) target bundleno = 1648 (0x670), region = 92  ;;  %s1539_s29 = smov (!%p513_p2), 1  }
   0xa   : > { %s1540_s30 = smov (!%p513_p2), 127   ;;  %s1542_s19 = smov (!%p513_p2), 2  }
   0xb   : > { %s2123_s24 = sld [smem:[#allocation3_spill]] (!%p513_p2)  ;;  %s2115_s1 = smov (!%p513_p2), 112  }
   0xc   : > { %s1544_s20 = smov (!%p513_p2), 16   ;;  %s1545_s21 = smov (!%p513_p2), 96  }
   0xd   : > { %s2126_s23 = smov (!%p513_p2), 32  }
   0xe   : > { %v1538_v0 = vmov 0   ;;  %s2128_s28 = smov (!%p566_p3, %s1472_s28), 1  ;;  %v597_v1 = vld [vmem:[%s2099_s5 + $0x8] sm:$0xff]  ;;  %vm646_vm0 = vcmask 1041408   ;;  %v598_v2 = vld [vmem:[%s2099_s5 + $0x10] sm:$0xff]  ;;  %v1528_v6 = vld [vmem:[%s2098_s4] sm:$0xff]   ;;  %v718_v26 = vlaneseq }
   0xf   : > { %685 = vmatprep.mubr.bf16.mxu0 %v1538_v0  ;;  %1526 = vset.pattern.permute.xlu0 %v1538_v0  ;;  %s1507_s0 = sshll.u32 %s2128_s28, 2  ;;  %vm639_vm1 = vcmask 31744   ;;  %v1529_v7 = vld [vmem:[%s2098_s4 + $0x8] sm:$0xff]   ;;  %v761_v24 = vld [vmem:[%s2101_s7] sm:$0xff]  ;;  %vm771_vm4 = vcmask 1043456   ;;  %vm767_vm6 = vcmask 195584  }
  0x10   : > { %810 = vmatprep.mubr.bf16.mxu1 %v1538_v0  ;;  %1527 = vset.pattern.permute.xlu1 %v1538_v0  ;;  %s570_s2 = scalar_lea.vmem %s2122_s22, %s1507_s0  ;;  %s1541_s0 = smov 126   ;;  %v987_v25 = vld [vmem:[%s2105_s11] sm:$0xff]  ;;  %v725_v27 = vshrl.u32 %v718_v26, 7  ;;  %v1716_v28 = vand.u32 127, %v718_v26  ;;  %vm993_vm8 = vcmask 326656  }
  0x11   : > { %607 = vperm.xlu0 %1526, %v597_v1   ;;  %v1489_v3 = vld.sshfl [vmem:[%s570_s2] sm:$0x33 pattern:$0x76325410]  ;;  %v1482_v31 = vld [vmem:[%s2123_s24 + $0x6] sm:$0x3] }
  0x12   : > { %v638_v4 = vcombine.high %v1489_v3, %v1489_v3  ;;  %v648_v5 = vsel %vm646_vm0, %v1489_v3, 0  ;;  %v1718_v29 = vsub.s32 0, %v725_v27  ;;  %v1720_v30 = vsub.s32 1, %v725_v27  ;;  %v1481_v36 = vld [vmem:[%s2123_s24 + $0x2] sm:$0x3]  ;;  %s2117_s22 = smov 32  }
  0x13   : > { %vm740_vm2 = vcmp.lt.s32.totalorder %v1716_v28, 127  ;;  %vm720_vm3 = vcmp.lt.s32.totalorder %v1716_v28, 1  ;;  %v1483_v45 = vld [vmem:[%s2123_s24 + $0x8] sm:$0x3]  ;;  %vm964_vm5 = vcmp.lt.s32.totalorder %v1716_v28, 126  ;;  %vm928_vm7 = vcmp.lt.s32.totalorder %v1716_v28, 2 }
  0x14   : > { %1490 = vmatprep.subr.msk.bf16.mxu0 %vm646_vm0, %v638_v4  ;;  %v1727_v34 = vrot.slane %v1482_v31, %v1718_v29  ;;  %v1730_v35 = vrot.slane %v1482_v31, %v1720_v30  ;;  %v1742_v42 = vrot.slane %v1481_v36, %v1718_v29  ;;  %v1745_v43 = vrot.slane %v1481_v36, %v1720_v30  ;;  %v760_v1 = vld [vmem:[%s2100_s6] sm:$0xf] }
  0x15   : > { %612 = vperm.xlu0 %1526, %v598_v2   ;;  %668 = vmatpush1.bf16.msra.mxu0 %v648_v5  ;;  %v1757_v51 = vrot.slane %v1483_v45, %v1718_v29  ;;  %v1764_v55 = vrot.slane %v1483_v45, %v1720_v30  ;;  %v986_v36 = vld [vmem:[%s2104_s10] sm:$0xf]  ;;  %vm843_vm9 = vcmp.lt.s32.totalorder %v1716_v28, 112  ;;  %vm823_vm10 = vcmp.lt.s32.totalorder %v1716_v28, 16 }
  0x16   : > { %vm1084_vm11 = vcmp.lt.s32.totalorder %v1716_v28, 96  ;;  %vm1048_vm12 = vcmp.lt.s32.totalorder %v1716_v28, 32 }
  0x18   : > { %1491 = vmatmul.mubr.msk.bf16.vlgmr.msra.gmra.mxu0 %vm639_vm1, %v1528_v6 }
  0x19   : > { %695 = vmatprep.mubr.bf16.mxu0 %v1538_v0 }
  0x20   : > { %1492 = vmatmul.mubr.msk.bf16.gmra.mxu0 %vm639_vm1, %v1529_v7 }
  0x21   : > { %1035 = vmatprep.mubr.bf16.mxu0 %v1538_v0 }
  0x8c   : > { %v608_v9 = vpop.permute.xlu0 %607 }
  0x90   : > { %v613_v16 = vpop.permute.xlu0 %612 }
  0xd8   : > { %v1674_v8 = vpop.f32.mrf.mxu0 }
  0xda   : > { %v1676_v10 = vpop.f32.mrf.mxu0 }
  0xdc   : > { %v691_v11 = vpop.f32.mrf.mxu0 }
  0xdd   : > { %v692_v12 = vadd.f32 %v691_v11, %v608_v9 }
  0xde   : > { %v693_v13 = vpop.f32.mrf.mxu0 }
  0xdf   : > { %v1678_v14 = vmax.f32 %v692_v12, 0.0  ;;  %v694_v15 = vadd.f32 %v693_v13, %v608_v9  ;;  %v577_v13 = vld [vmem:[%s2123_s24] sm:$0x3] }
  0xe0   : > { %v697_v17 = vpop.f32.mrf.mxu0 }
  0xe1   : > { %v698_v18 = vadd.f32 %v697_v17, %v613_v16  ;;  %714 = vrot.lane.b32.xlu0 %v1678_v14, %s1539_s29  ;;  %736 = vrot.lane.b32.xlu1 %v1678_v14, %s1540_s30  ;;  %v1684_v19 = vmax.f32 %v694_v15, 0.0  ;;  %v1794_v17 = vrot.slane %v577_v13, %v1718_v29 }
  0xe2   : > { %v699_v21 = vpop.f32.mrf.mxu0 }
  0xe3   : > { %v1686_v20 = vmax.f32 %v698_v18, 0.0  ;;  %v700_v22 = vadd.f32 %v699_v21, %v613_v16  ;;  %v1797_v18 = vrot.slane %v577_v13, %v1720_v30 }
  0xe5   : > { %960 = vrot.lane.b32.xlu0 %v1686_v20, %s1541_s0  ;;  %738 = vrot.lane.b32.xlu1 %v1684_v19, %s1540_s30  ;;  %v1696_v23 = vmax.f32 %v700_v22, 0.0 }
  0xe9   : > { %952 = vrot.lane.b32.xlu0 %v1686_v20, %s1540_s30  ;;  %716 = vrot.lane.b32.xlu1 %v1684_v19, %s1539_s29 }
  0xed   : > { %924 = vrot.lane.b32.xlu0 %v1686_v20, %s1542_s19  ;;  %962 = vrot.lane.b32.xlu1 %v1696_v23, %s1541_s0 }
  0xf1   : > { %944 = vrot.lane.b32.xlu0 %v1686_v20, %s1539_s29  ;;  %954 = vrot.lane.b32.xlu1 %v1696_v23, %s1540_s30 }
  0xf5   : > { %764 = vperm.xlu0 %1526, %v761_v24   ;;  %926 = vrot.lane.b32.xlu1 %v1696_v23, %s1542_s19 }
  0xf9   : > { %946 = vrot.lane.b32.xlu1 %v1696_v23, %s1539_s29 }
  0xfd   : > { %990 = vperm.xlu1 %1527, %v987_v25  }
 0x153   : > { %v715_v32 = vpop.permute.xlu0 %714  ;;  %v737_v33 = vpop.permute.xlu1 %736 }
 0x157   : > { %v739_v37 = vpop.permute.xlu1 %738  ;;  %v961_v40 = vpop.permute.xlu0 %960 }
 0x158   : > { %v741_v38 = vsel %vm740_vm2, %v737_v33, %v739_v37  ;;  %v742_v39 = vsel %vm740_vm2, %v739_v37, %v737_v33 }
 0x159   : > { %v754_v41 = vmul.f32 %v1727_v34, %v741_v38  ;;  %v755_v44 = vmul.f32 %v1730_v35, %v742_v39 }
 0x15b   : > { %v717_v46 = vpop.permute.xlu1 %716  ;;  %v759_v47 = vpack.c.bf16 %v755_v44, %v755_v44  ;;  %v758_v48 = vpack.c.bf16 %v754_v41, %v754_v41  ;;  %v953_v56 = vpop.permute.xlu0 %952 }
 0x15c   : > { %v721_v49 = vsel %vm720_vm3, %v715_v32, %v717_v46  ;;  %v722_v50 = vsel %vm720_vm3, %v717_v46, %v715_v32  ;;  %v1820_v46 = vpop.f32.mrf.mxu0 }
 0x15d   : > { %v734_v52 = vmul.f32 %v1742_v42, %v722_v50  ;;  %v735_v53 = vmul.f32 %v1745_v43, %v721_v49  ;;  %1493 = vmatprep.subr.msk.bf16.mxu1 %vm771_vm4, %v759_v47  ;;  %v773_v54 = vsel %vm771_vm4, %v758_v48, 0 }
 0x15e   : > { %791 = vmatpush1.bf16.msra.mxu1 %v773_v54  ;;  %v1822_v47 = vpop.f32.mrf.mxu0 }
 0x15f   : > { %v963_v57 = vpop.permute.xlu1 %962  ;;  %v757_v58 = vpack.c.bf16 %v1684_v19, %v735_v53  ;;  %v756_v59 = vpack.c.bf16 %v1678_v14, %v734_v52  ;;  %v925_v7 = vpop.permute.xlu0 %924 }
 0x160   : > { %v965_v60 = vsel %vm964_vm5, %v961_v40, %v963_v57  ;;  %v966_v61 = vsel %vm964_vm5, %v963_v57, %v961_v40  ;;  %v1107_v57 = vld [vmem:[%s2107_s13] sm:$0xff] }
 0x161   : > { %v978_v62 = vmul.f32 %v1757_v51, %v965_v60  ;;  %v979_v63 = vmul.f32 %v1764_v55, %v966_v61  ;;  %792 = vmatprep.subr.bf16.mxu1 %v757_v58 }
 0x162   : > { %793 = vmatpush1.bf16.msra.mxu1 %v756_v59 }
 0x163   : > { %v984_v2 = vpack.c.bf16 %v978_v62, %v978_v62  ;;  %v985_v3 = vpack.c.bf16 %v979_v63, %v979_v63  ;;  %v955_v4 = vpop.permute.xlu1 %954 }
 0x164   : > { %v956_v5 = vsel %vm740_vm2, %v953_v56, %v955_v4  ;;  %v957_v6 = vsel %vm740_vm2, %v955_v4, %v953_v56 }
 0x165   : > { %v958_v9 = vmul.f32 %v956_v5, %v1727_v34  ;;  %v959_v11 = vmul.f32 %v957_v6, %v1730_v35  ;;  %1494 = vmatmul.mubr.msk.bf16.vlgmr.msra.gmra.mxu1 %vm767_vm6, %v760_v1  ;;  %1497 = vmatprep.subr.msk.bf16.mxu0 %vm771_vm4, %v985_v3  ;;  %v998_v12 = vsel %vm771_vm4, %v984_v2, 0 }
 0x166   : > { %1014 = vmatpush1.bf16.msra.mxu0 %v998_v12  ;;  %911 = vmatprep.mubr.bf16.mxu1 %v1538_v0 }
 0x167   : > { %v982_v14 = vpack.c.bf16 %v958_v9, %v1686_v20  ;;  %v927_v15 = vpop.permute.xlu1 %926  ;;  %v983_v16 = vpack.c.bf16 %v959_v11, %v1696_v23  ;;  %v945_v20 = vpop.permute.xlu0 %944 }
 0x168   : > { %v929_v19 = vsel %vm928_vm7, %v925_v7, %v927_v15  ;;  %v930_v21 = vsel %vm928_vm7, %v927_v15, %v925_v7 }
 0x169   : > { %1015 = vmatprep.subr.bf16.mxu0 %v983_v16  ;;  %v942_v25 = vmul.f32 %v1794_v17, %v930_v21  ;;  %v943_v26 = vmul.f32 %v1797_v18, %v929_v19 }
 0x16a   : > { %1016 = vmatpush1.bf16.msra.mxu0 %v982_v14 }
 0x16b   : > { %v947_v22 = vpop.permute.xlu1 %946 }
 0x16c   : > { %v948_v24 = vsel %vm720_vm3, %v945_v20, %v947_v22  ;;  %v949_v23 = vsel %vm720_vm3, %v947_v22, %v945_v20 }
 0x16d   : > { %v950_v27 = vmul.f32 %v949_v23, %v1742_v42  ;;  %v951_v31 = vmul.f32 %v948_v24, %v1745_v43  ;;  %v863_v24 = vld [vmem:[%s2102_s8] sm:$0xf] }
 0x16f   : > { %v980_v32 = vpack.c.bf16 %v950_v27, %v942_v25  ;;  %v981_v33 = vpack.c.bf16 %v951_v31, %v943_v26 }
 0x170   : > { %v765_v37 = vpop.permute.xlu0 %764 }
 0x171   : > { %1017 = vmatprep.subr.bf16.mxu0 %v981_v33 }
 0x172   : > { %1018 = vmatpush1.bf16.msra.mxu0 %v980_v32 }
 0x175   : > { %1498 = vmatmul.mubr.msk.bf16.vlgmr.msra.gmra.mxu0 %vm993_vm8, %v986_v36 }
 0x176   : > { %1251 = vmatprep.mubr.bf16.mxu0 %v1538_v0 }
 0x178   : > { %v991_v48 = vpop.permute.xlu1 %990 }
 0x225   : > { %v812_v38 = vpop.f32.mrf.mxu1 }
 0x226   : > { %v813_v39 = vadd.f32 %v812_v38, %v765_v37 }
 0x227   : > { %v814_v40 = vpop.f32.mrf.mxu1 }
 0x228   : > { %v815_v41 = vadd.f32 %v814_v40, %v765_v37  ;;  %839 = vrot.lane.b32.xlu0 %v813_v39, %s2115_s1 }
 0x229   : > { %v816_v44 = vpop.f32.mrf.mxu1 }
 0x22a   : > { %841 = vrot.lane.b32.xlu1 %v815_v41, %s2115_s1 }
 0x22b   : > { %v817_v45 = vpop.f32.mrf.mxu1 }
 0x22c   : > { %819 = vrot.lane.b32.xlu0 %v813_v39, %s1544_s20 }
 0x22e   : > { %821 = vrot.lane.b32.xlu1 %v815_v41, %s1544_s20 }
 0x235   : > { %v1037_v49 = vpop.f32.mrf.mxu0 }
 0x236   : > { %v1824_v50 = vadd.f32 %v1037_v49, %v991_v48 }
 0x237   : > { %v1039_v52 = vpop.f32.mrf.mxu0 }
 0x238   : > { %v1826_v53 = vadd.f32 %v1039_v52, %v991_v48  ;;  %1080 = vrot.lane.b32.xlu0 %v1824_v50, %s1545_s21 }
 0x239   : > { %v1041_v54 = vpop.f32.mrf.mxu0 }
 0x23a   : > { %1082 = vrot.lane.b32.xlu1 %v1826_v53, %s1545_s21 }
 0x23b   : > { %v1042_v56 = vpop.f32.mrf.mxu0 }
 0x23c   : > { %1072 = vrot.lane.b32.xlu0 %v1824_v50, %s2115_s1 }
 0x23e   : > { %1074 = vrot.lane.b32.xlu1 %v1826_v53, %s2115_s1  ;;  %s2124_s1 = sld [smem:[#allocation4_spill]] }
 0x240   : > { %1044 = vrot.lane.b32.xlu0 %v1824_v50, %s2117_s22 }
 0x242   : > { %1046 = vrot.lane.b32.xlu1 %v1826_v53, %s2117_s22  ;;  %s2125_s22 = smov 112  }
 0x244   : > { %1064 = vrot.lane.b32.xlu0 %v1824_v50, %s1544_s20  ;;  %v1485_v58 = vld [vmem:[%s2124_s1 + $0x6] sm:$0x3]  ;;  %v1484_v62 = vld [vmem:[%s2124_s1 + $0x2] sm:$0x3]  ;;  %v1486_v22 = vld [vmem:[%s2124_s1 + $0x8] sm:$0x3] }
 0x245   : > { %v1852_v60 = vrot.slane %v1485_v58, %v1718_v29  ;;  %v1855_v61 = vrot.slane %v1485_v58, %v1720_v30  ;;  %v1868_v5 = vrot.slane %v1484_v62, %v1718_v29  ;;  %v1871_v6 = vrot.slane %v1484_v62, %v1720_v30  ;;  %v584_v54 = vld [vmem:[%s2124_s1] sm:$0x3] }
 0x246   : > { %1066 = vrot.lane.b32.xlu1 %v1826_v53, %s1544_s20  ;;  %v1889_v25 = vrot.slane %v1486_v22, %v1718_v29  ;;  %v1892_v26 = vrot.slane %v1486_v22, %v1720_v30  ;;  %v1920_v62 = vrot.slane %v584_v54, %v1720_v30 }
 0x248   : > { %1110 = vperm.xlu0 %1526, %v1107_v57  }
 0x29a   : > { %v840_v59 = vpop.permute.xlu0 %839 }
 0x29c   : > { %v842_v63 = vpop.permute.xlu1 %841 }
 0x29d   : > { %v844_v1 = vsel %vm843_vm9, %v840_v59, %v842_v63  ;;  %v845_v2 = vsel %vm843_vm9, %v842_v63, %v840_v59  ;;  %v1917_v59 = vrot.slane %v584_v54, %v1718_v29 }
 0x29e   : > { %v857_v3 = vmul.f32 %v1852_v60, %v844_v1  ;;  %v858_v4 = vmul.f32 %v1855_v61, %v845_v2  ;;  %v820_v11 = vpop.permute.xlu0 %819 }
 0x2a0   : > { %v861_v7 = vpack.c.bf16 %v857_v3, %v857_v3  ;;  %v862_v9 = vpack.c.bf16 %v858_v4, %v858_v4  ;;  %v822_v12 = vpop.permute.xlu1 %821 }
 0x2a1   : > { %v824_v13 = vsel %vm823_vm10, %v820_v11, %v822_v12  ;;  %v825_v14 = vsel %vm823_vm10, %v822_v12, %v820_v11 }
 0x2a2   : > { %v837_v15 = vmul.f32 %v1868_v5, %v825_v14  ;;  %v838_v16 = vmul.f32 %v1871_v6, %v824_v13  ;;  %1495 = vmatprep.subr.msk.bf16.mxu1 %vm771_vm4, %v862_v9  ;;  %v874_v19 = vsel %vm771_vm4, %v861_v7, 0  ;;  %v1106_v14 = vld [vmem:[%s2106_s12] sm:$0xf] }
 0x2a3   : > { %892 = vmatpush1.bf16.msra.mxu1 %v874_v19 }
 0x2a4   : > { %v859_v21 = vpack.c.bf16 %v813_v39, %v837_v15  ;;  %v860_v20 = vpack.c.bf16 %v815_v41, %v838_v16 }
 0x2a6   : > { %893 = vmatprep.subr.bf16.mxu1 %v860_v20 }
 0x2a7   : > { %894 = vmatpush1.bf16.msra.mxu1 %v859_v21 }
 0x2aa   : > { %v1081_v23 = vpop.permute.xlu0 %1080  ;;  %1496 = vmatmul.mubr.msk.bf16.vlgmr.msra.gmra.mxu1 %vm767_vm6, %v863_v24 }
 0x2ab   : > { %1154 = vmatprep.mubr.bf16.mxu1 %v1538_v0 }
 0x2ac   : > { %v1083_v27 = vpop.permute.xlu1 %1082 }
 0x2ad   : > { %v1085_v31 = vsel %vm1084_vm11, %v1081_v23, %v1083_v27  ;;  %v1086_v32 = vsel %vm1084_vm11, %v1083_v27, %v1081_v23 }
 0x2ae   : > { %v1098_v33 = vmul.f32 %v1889_v25, %v1085_v31  ;;  %v1099_v36 = vmul.f32 %v1892_v26, %v1086_v32  ;;  %v1073_v37 = vpop.permute.xlu0 %1072 }
 0x2b0   : > { %v1104_v38 = vpack.c.bf16 %v1098_v33, %v1098_v33  ;;  %v1105_v39 = vpack.c.bf16 %v1099_v36, %v1099_v36  ;;  %v1075_v40 = vpop.permute.xlu1 %1074 }
 0x2b1   : > { %v1076_v41 = vsel %vm843_vm9, %v1073_v37, %v1075_v40  ;;  %v1077_v44 = vsel %vm843_vm9, %v1075_v40, %v1073_v37 }
 0x2b2   : > { %v1078_v45 = vmul.f32 %v1076_v41, %v1852_v60  ;;  %v1079_v48 = vmul.f32 %v1077_v44, %v1855_v61  ;;  %v1045_v49 = vpop.permute.xlu0 %1044  ;;  %1499 = vmatprep.subr.msk.bf16.mxu1 %vm771_vm4, %v1105_v39  ;;  %v1117_v52 = vsel %vm771_vm4, %v1104_v38, 0 }
 0x2b3   : > { %1133 = vmatpush1.bf16.msra.mxu1 %v1117_v52 }
 0x2b4   : > { %v1102_v56 = vpack.c.bf16 %v1078_v45, %v1824_v50  ;;  %v1047_v57 = vpop.permute.xlu1 %1046  ;;  %v1103_v58 = vpack.c.bf16 %v1079_v48, %v1826_v53 }
 0x2b5   : > { %v1049_v63 = vsel %vm1048_vm12, %v1045_v49, %v1047_v57  ;;  %v1050_v1 = vsel %vm1048_vm12, %v1047_v57, %v1045_v49 }
 0x2b6   : > { %1134 = vmatprep.subr.bf16.mxu1 %v1103_v58  ;;  %v1065_v50 = vpop.permute.xlu0 %1064  ;;  %v1062_v4 = vmul.f32 %v1917_v59, %v1050_v1  ;;  %v1063_v7 = vmul.f32 %v1920_v62, %v1049_v63 }
 0x2b7   : > { %1135 = vmatpush1.bf16.msra.mxu1 %v1102_v56 }
 0x2b8   : > { %v1067_v2 = vpop.permute.xlu1 %1066 }
 0x2b9   : > { %v1068_v3 = vsel %vm823_vm10, %v1065_v50, %v1067_v2  ;;  %v1069_v53 = vsel %vm823_vm10, %v1067_v2, %v1065_v50 }
 0x2ba   : > { %v1070_v9 = vmul.f32 %v1069_v53, %v1868_v5  ;;  %v1071_v11 = vmul.f32 %v1068_v3, %v1871_v6 }
 0x2bc   : > { %v1100_v12 = vpack.c.bf16 %v1070_v9, %v1062_v4  ;;  %v1101_v13 = vpack.c.bf16 %v1071_v11, %v1063_v7 }
 0x2be   : > { %1136 = vmatprep.subr.bf16.mxu1 %v1101_v13 }
 0x2bf   : > { %1137 = vmatpush1.bf16.msra.mxu1 %v1100_v12 }
 0x2c2   : > { %1500 = vmatmul.mubr.msk.bf16.vlgmr.msra.gmra.mxu1 %vm993_vm8, %v1106_v14 }
 0x2c3   : > { %1346 = vmatprep.mubr.bf16.mxu1 %v1538_v0  ;;  %v1111_v20 = vpop.permute.xlu0 %1110  ;;  %v1204_v0 = vld [vmem:[%s2109_s15] sm:$0xff] }
 0x36a   : > { %v1939_v15 = vpop.f32.mrf.mxu1 }
 0x36c   : > { %v1941_v16 = vpop.f32.mrf.mxu1 }
 0x36e   : > { %v917_v19 = vpop.f32.mrf.mxu1 }
 0x370   : > { %v918_v21 = vpop.f32.mrf.mxu1 }
 0x382   : > { %v1156_v22 = vpop.f32.mrf.mxu1 }
 0x383   : > { %v1157_v24 = vadd.f32 %v1156_v22, %v1111_v20 }
 0x384   : > { %v1158_v23 = vpop.f32.mrf.mxu1 }
 0x385   : > { %v1163_v27 = vmax.f32 %v1157_v24, 0.0  ;;  %v1159_v31 = vadd.f32 %v1158_v23, %v1111_v20  ;;  %v1203_v20 = vld [vmem:[%s2108_s14] sm:$0xf] }
 0x386   : > { %v1160_v32 = vpop.f32.mrf.mxu1 }
 0x387   : > { %v1164_v33 = vmax.f32 %v1159_v31, 0.0  ;;  %1189 = vrot.lane.b32.xlu1 %v1163_v27, %s1541_s0  ;;  %v599_v32 = vld [vmem:[%s2099_s5 + $0x18] sm:$0xff] }
 0x388   : > { %v1161_v36 = vpop.f32.mrf.mxu1 }
 0x389   : > { %1191 = vrot.lane.b32.xlu0 %v1164_v33, %s1541_s0 }
 0x38b   : > { %1181 = vrot.lane.b32.xlu1 %v1163_v27, %s1540_s30 }
 0x38d   : > { %1183 = vrot.lane.b32.xlu0 %v1164_v33, %s1540_s30 }
 0x38f   : > { %1165 = vrot.lane.b32.xlu1 %v1163_v27, %s1542_s19 }
 0x391   : > { %1167 = vrot.lane.b32.xlu0 %v1164_v33, %s1542_s19 }
 0x393   : > { %1173 = vrot.lane.b32.xlu1 %v1163_v27, %s1539_s29 }
 0x395   : > { %1175 = vrot.lane.b32.xlu0 %v1164_v33, %s1539_s29 }
 0x397   : > { %1207 = vperm.xlu1 %1527, %v1204_v0  }
 0x3f9   : > { %v1190_v37 = vpop.permute.xlu1 %1189 }
 0x3fb   : > { %v1192_v38 = vpop.permute.xlu0 %1191 }
 0x3fc   : > { %v1193_v39 = vsel %vm964_vm5, %v1190_v37, %v1192_v38  ;;  %v1194_v40 = vsel %vm964_vm5, %v1192_v38, %v1190_v37 }
 0x3fd   : > { %v1195_v41 = vmul.f32 %v1193_v39, %v1757_v51  ;;  %v1196_v44 = vmul.f32 %v1194_v40, %v1764_v55  ;;  %v1182_v45 = vpop.permute.xlu1 %1181 }
 0x3ff   : > { %v1201_v48 = vpack.c.bf16 %v1195_v41, %v1195_v41  ;;  %v1202_v49 = vpack.c.bf16 %v1196_v44, %v1196_v44  ;;  %v1184_v52 = vpop.permute.xlu0 %1183 }
 0x400   : > { %v1185_v54 = vsel %vm740_vm2, %v1182_v45, %v1184_v52  ;;  %v1186_v56 = vsel %vm740_vm2, %v1184_v52, %v1182_v45 }
 0x401   : > { %v1187_v57 = vmul.f32 %v1185_v54, %v1727_v34  ;;  %v1188_v58 = vmul.f32 %v1186_v56, %v1730_v35  ;;  %1501 = vmatprep.subr.msk.bf16.mxu0 %vm771_vm4, %v1202_v49  ;;  %v1166_v63 = vpop.permute.xlu1 %1165  ;;  %v1214_v51 = vsel %vm771_vm4, %v1201_v48, 0 }
 0x402   : > { %1230 = vmatpush1.bf16.msra.mxu0 %v1214_v51 }
 0x403   : > { %v1199_v55 = vpack.c.bf16 %v1187_v57, %v1163_v27  ;;  %v1168_v1 = vpop.permute.xlu0 %1167  ;;  %v1200_v50 = vpack.c.bf16 %v1188_v58, %v1164_v33 }
 0x404   : > { %v1169_v2 = vsel %vm928_vm7, %v1166_v63, %v1168_v1  ;;  %v1170_v3 = vsel %vm928_vm7, %v1168_v1, %v1166_v63 }
 0x405   : > { %1231 = vmatprep.subr.bf16.mxu0 %v1200_v50  ;;  %v1174_v53 = vpop.permute.xlu1 %1173  ;;  %v1171_v11 = vmul.f32 %v1170_v3, %v1794_v17  ;;  %v1172_v12 = vmul.f32 %v1169_v2, %v1797_v18 }
 0x406   : > { %1232 = vmatpush1.bf16.msra.mxu0 %v1199_v55 }
 0x407   : > { %v1176_v4 = vpop.permute.xlu0 %1175 }
 0x408   : > { %v1177_v7 = vsel %vm720_vm3, %v1174_v53, %v1176_v4  ;;  %v1178_v9 = vsel %vm720_vm3, %v1176_v4, %v1174_v53 }
 0x409   : > { %v1179_v13 = vmul.f32 %v1178_v9, %v1742_v42  ;;  %v1180_v14 = vmul.f32 %v1177_v7, %v1745_v43 }
 0x40b   : > { %v1197_v19 = vpack.c.bf16 %v1179_v13, %v1171_v11  ;;  %v1198_v21 = vpack.c.bf16 %v1180_v14, %v1172_v12  ;;  %v1298_v12 = vld [vmem:[%s2110_s16] sm:$0xf] }
 0x40d   : > { %1233 = vmatprep.subr.bf16.mxu0 %v1198_v21 }
 0x40e   : > { %1234 = vmatpush1.bf16.msra.mxu0 %v1197_v19 }
 0x411   : > { %1502 = vmatmul.mubr.msk.bf16.vlgmr.msra.gmra.mxu0 %vm993_vm8, %v1203_v20 }
 0x412   : > { %v1208_v22 = vpop.permute.xlu1 %1207 }
 0x4d1   : > { %v1253_v24 = vpop.f32.mrf.mxu0 }
 0x4d2   : > { %v1254_v23 = vadd.f32 %v1253_v24, %v1208_v22 }
 0x4d3   : > { %v1255_v17 = vpop.f32.mrf.mxu0 }
 0x4d4   : > { %v1256_v27 = vadd.f32 %v1255_v17, %v1208_v22  ;;  %1284 = vrot.lane.b32.xlu0 %v1254_v23, %s1545_s21 }
 0x4d5   : > { %v1257_v18 = vpop.f32.mrf.mxu0 }
 0x4d6   : > { %1286 = vrot.lane.b32.xlu1 %v1256_v27, %s1545_s21 }
 0x4d7   : > { %v1258_v31 = vpop.f32.mrf.mxu0 }
 0x4d8   : > { %1276 = vrot.lane.b32.xlu0 %v1254_v23, %s2125_s22 }
 0x4da   : > { %1278 = vrot.lane.b32.xlu1 %v1256_v27, %s2125_s22 }
 0x4dc   : > { %1260 = vrot.lane.b32.xlu0 %v1254_v23, %s2126_s23 }
 0x4de   : > { %1262 = vrot.lane.b32.xlu1 %v1256_v27, %s2126_s23 }
 0x4e0   : > { %1268 = vrot.lane.b32.xlu0 %v1254_v23, %s1544_s20 }
 0x4e2   : > { %1270 = vrot.lane.b32.xlu1 %v1256_v27, %s1544_s20 }
 0x4e4   : > { %617 = vperm.xlu0 %1526, %v599_v32  }
 0x546   : > { %v1285_v33 = vpop.permute.xlu0 %1284 }
 0x548   : > { %v1287_v36 = vpop.permute.xlu1 %1286 }
 0x549   : > { %v1288_v0 = vsel %vm1084_vm11, %v1285_v33, %v1287_v36  ;;  %v1289_v37 = vsel %vm1084_vm11, %v1287_v36, %v1285_v33 }
 0x54a   : > { %v1290_v38 = vmul.f32 %v1288_v0, %v1889_v25  ;;  %v1291_v39 = vmul.f32 %v1289_v37, %v1892_v26  ;;  %v1277_v40 = vpop.permute.xlu0 %1276 }
 0x54c   : > { %v1296_v41 = vpack.c.bf16 %v1290_v38, %v1290_v38  ;;  %v1297_v44 = vpack.c.bf16 %v1291_v39, %v1291_v39  ;;  %v1279_v45 = vpop.permute.xlu1 %1278 }
 0x54d   : > { %v1280_v48 = vsel %vm843_vm9, %v1277_v40, %v1279_v45  ;;  %v1281_v49 = vsel %vm843_vm9, %v1279_v45, %v1277_v40 }
 0x54e   : > { %v1282_v52 = vmul.f32 %v1280_v48, %v1852_v60  ;;  %v1283_v54 = vmul.f32 %v1281_v49, %v1855_v61  ;;  %1503 = vmatprep.subr.msk.bf16.mxu1 %vm771_vm4, %v1297_v44  ;;  %v1261_v56 = vpop.permute.xlu0 %1260  ;;  %v1309_v25 = vsel %vm771_vm4, %v1296_v41, 0 }
 0x54f   : > { %1325 = vmatpush1.bf16.msra.mxu1 %v1309_v25 }
 0x550   : > { %v1294_v26 = vpack.c.bf16 %v1282_v52, %v1254_v23  ;;  %v1263_v57 = vpop.permute.xlu1 %1262  ;;  %v1295_v58 = vpack.c.bf16 %v1283_v54, %v1256_v27 }
 0x551   : > { %v1264_v63 = vsel %vm1048_vm12, %v1261_v56, %v1263_v57  ;;  %v1265_v51 = vsel %vm1048_vm12, %v1263_v57, %v1261_v56 }
 0x552   : > { %1326 = vmatprep.subr.bf16.mxu1 %v1295_v58  ;;  %v1269_v55 = vpop.permute.xlu0 %1268  ;;  %v1266_v3 = vmul.f32 %v1265_v51, %v1917_v59  ;;  %v1267_v53 = vmul.f32 %v1264_v63, %v1920_v62  ;;  %v1399_v51 = vld [vmem:[%s2097_s3] sm:$0x3] }
 0x553   : > { %1327 = vmatpush1.bf16.msra.mxu1 %v1294_v26 }
 0x554   : > { %v1271_v1 = vpop.permute.xlu1 %1270 }
 0x555   : > { %v1272_v50 = vsel %vm823_vm10, %v1269_v55, %v1271_v1  ;;  %v1273_v2 = vsel %vm823_vm10, %v1271_v1, %v1269_v55 }
 0x556   : > { %v1274_v4 = vmul.f32 %v1273_v2, %v1868_v5  ;;  %v1275_v7 = vmul.f32 %v1272_v50, %v1871_v6 }
 0x558   : > { %v1292_v9 = vpack.c.bf16 %v1274_v4, %v1266_v3  ;;  %v1293_v11 = vpack.c.bf16 %v1275_v7, %v1267_v53  ;;  %v1404_v3 = vrot.slane %v1399_v51, %v1718_v29  ;;  %v1408_v53 = vrot.slane %v1399_v51, %v1720_v30 }
 0x55a   : > { %1328 = vmatprep.subr.bf16.mxu1 %v1293_v11 }
 0x55b   : > { %1329 = vmatpush1.bf16.msra.mxu1 %v1292_v9 }
 0x55e   : > { %1504 = vmatmul.mubr.msk.bf16.vlgmr.msra.gmra.mxu1 %vm993_vm8, %v1298_v12 }
 0x55f   : > { %v618_v13 = vpop.permute.xlu0 %617 }
 0x560   : > { %v702_v14 = vadd.f32 %v1820_v46, %v618_v13  ;;  %v704_v59 = vadd.f32 %v1822_v47, %v618_v13 }
 0x562   : > { %1361 = vrot.lane.b32.xlu0 %v704_v59, %s1539_s29  ;;  %1359 = vrot.lane.b32.xlu1 %v702_v14, %s1539_s29 }
 0x566   : > { %1371 = vrot.lane.b32.xlu0 %v704_v59, %s1540_s30  ;;  %1369 = vrot.lane.b32.xlu1 %v702_v14, %s1540_s30 }
 0x5d4   : > { %v1362_v62 = vpop.permute.xlu0 %1361  ;;  %v1360_v19 = vpop.permute.xlu1 %1359 }
 0x5d5   : > { %v1363_v21 = vsel %vm720_vm3, %v1360_v19, %v1362_v62  ;;  %v1364_v20 = vsel %vm720_vm3, %v1362_v62, %v1360_v19 }
 0x5d6   : > { %v1365_v46 = vmul.f32 %v1364_v20, %v1742_v42  ;;  %v1366_v47 = vmul.f32 %v1363_v21, %v1745_v43  ;;  %v864_v42 = vld [vmem:[%s2103_s9] sm:$0xff] }
 0x5d7   : > { %v596_v43 = vld [vmem:[%s2099_s5] sm:$0xff] }
 0x5d8   : > { %v1372_v22 = vpop.permute.xlu0 %1371  ;;  %v1370_v24 = vpop.permute.xlu1 %1369  ;;  %v1367_v27 = vadd.f32 %v1365_v46, %v702_v14  ;;  %v1368_v18 = vadd.f32 %v1366_v47, %v704_v59 }
 0x5d9   : > { %v1373_v23 = vsel %vm740_vm2, %v1370_v24, %v1372_v22  ;;  %v1374_v17 = vsel %vm740_vm2, %v1372_v22, %v1370_v24 }
 0x5da   : > { %v1375_v31 = vmul.f32 %v1373_v23, %v1727_v34  ;;  %v1376_v32 = vmul.f32 %v1374_v17, %v1730_v35  ;;  %v1299_v34 = vld [vmem:[%s2111_s17] sm:$0xff] }
 0x5dc   : > { %v1378_v33 = vadd.f32 %v1376_v32, %v1368_v18  ;;  %v1377_v36 = vadd.f32 %v1375_v31, %v1367_v27 }
 0x5de   : > { %1381 = vrot.lane.b32.xlu0 %v1378_v33, %s1544_s20  ;;  %1379 = vrot.lane.b32.xlu1 %v1377_v36, %s1544_s20  ;;  %s1508_s20 = sshll.u32 %s2128_s28, 6 }
 0x5e2   : > { %867 = vperm.xlu0 %1526, %v864_v42   ;;  %602 = vperm.xlu1 %1527, %v596_v43  }
 0x5e6   : > { %1389 = vrot.lane.b32.xlu0 %v1377_v36, %s2125_s22  ;;  %1302 = vperm.xlu1 %1527, %v1299_v34  }
 0x5ea   : > { %1391 = vrot.lane.b32.xlu1 %v1378_v33, %s2125_s22  ;;  %s2064_s22 = scalar_lea.vmem %s2112_s18, %s1508_s20 }
 0x61e   : > { %v1348_v35 = vpop.f32.mrf.mxu1 }
 0x620   : > { %v1350_v0 = vpop.f32.mrf.mxu1 }
 0x622   : > { %v1352_v37 = vpop.f32.mrf.mxu1 }
 0x624   : > { %v1353_v38 = vpop.f32.mrf.mxu1 }
 0x650   : > { %v1382_v39 = vpop.permute.xlu0 %1381  ;;  %v1380_v40 = vpop.permute.xlu1 %1379 }
 0x651   : > { %v1383_v54 = vsel %vm823_vm10, %v1380_v40, %v1382_v39 }
 0x652   : > { %v1386_v63 = vmul.f32 %v1383_v54, %v1871_v6 }
 0x654   : > { %v1388_v7 = vadd.f32 %v1386_v63, %v1378_v33 }
 0x65d   : > { %v868_v41 = vpop.permute.xlu0 %867  ;;  %v603_v44 = vpop.permute.xlu1 %602 }
 0x65e   : > { %v914_v45 = vadd.f32 %v1939_v15, %v868_v41  ;;  %v916_v48 = vadd.f32 %v1941_v16, %v868_v41  ;;  %v688_v49 = vadd.f32 %v1674_v8, %v603_v44  ;;  %v690_v52 = vadd.f32 %v1676_v10, %v603_v44 }
 0x65f   : > { %v1384_v15 = vsel %vm823_vm10, %v1382_v39, %v1380_v40 }
 0x660   : > { %v920_v16 = vmax.f32 %v914_v45, 0.0  ;;  %v921_v56 = vmax.f32 %v916_v48, 0.0  ;;  %v706_v8 = vmax.f32 %v688_v49, 0.0  ;;  %v707_v10 = vmax.f32 %v690_v52, 0.0 }
 0x661   : > { %v1303_v25 = vpop.permute.xlu1 %1302  ;;  %v1385_v58 = vmul.f32 %v1384_v15, %v1868_v5  ;;  %v1390_v50 = vpop.permute.xlu0 %1389 }
 0x662   : > { %922 = vst [vmem:[%s2064_s22 + $0x10] sm:$0xff] %v920_v16  ;;  %923 = vst [vmem:[%s2064_s22 + $0x18] sm:$0xff] %v921_v56  ;;  %v1349_v26 = vadd.f32 %v1348_v35, %v1303_v25  ;;  %v1351_v57 = vadd.f32 %v1350_v0, %v1303_v25 }
 0x663   : > { %712 = vst [vmem:[%s2064_s22] sm:$0xff] %v706_v8  ;;  %713 = vst [vmem:[%s2064_s22 + $0x8] sm:$0xff] %v707_v10  ;;  %v1387_v4 = vadd.f32 %v1385_v58, %v1377_v36 }
 0x664   : > { %v1355_v55 = vmax.f32 %v1349_v26, 0.0  ;;  %v1356_v1 = vmax.f32 %v1351_v57, 0.0 }
 0x665   : > { %v1392_v2 = vpop.permute.xlu1 %1391 }
 0x666   : > { %1357 = vst [vmem:[%s2064_s22 + $0x20] sm:$0xff] %v1355_v55  ;;  %1358 = vst [vmem:[%s2064_s22 + $0x28] sm:$0xff] %v1356_v1  ;;  %v1393_v5 = vsel %vm843_vm9, %v1390_v50, %v1392_v2  ;;  %v1394_v6 = vsel %vm843_vm9, %v1392_v2, %v1390_v50 }
 0x667   : > { %v1395_v9 = vmul.f32 %v1393_v5, %v1852_v60  ;;  %v1396_v11 = vmul.f32 %v1394_v6, %v1855_v61 }
 0x669   : > { %v1397_v12 = vadd.f32 %v1395_v9, %v1387_v4  ;;  %v1398_v13 = vadd.f32 %v1396_v11, %v1388_v7 }
 0x66b   : > { %v1411_v14 = vmul.f32 %v1404_v3, %v1397_v12  ;;  %v1412_v59 = vmul.f32 %v1408_v53, %v1398_v13 }
 0x66d   : > { %v1413_v62 = vmax.f32 %v1411_v14, 0.0  ;;  %v1414_v29 = vmax.f32 %v1412_v59, 0.0 }
 0x66f   : > { %1415 = vst [vmem:[%s2064_s22 + $0x30] sm:$0xff] %v1413_v62  ;;  %1416 = vst [vmem:[%s2064_s22 + $0x38] sm:$0xff] %v1414_v29 }
 0x670 PF: > { %s28_s27 = sadd.s32 1, %s1536_s27  }
 0x671   : > { %p25_p4 = scmp.ge.s32.totalorder %s28_s27, 4  }
 0x673   :  { %27 = sbr.rel (!%p25_p4) target bundleno = 4 (0x4), region = 128 }

</bundles_post_ra>
